<compile_context>
chip_gen: v5e
topology: v5e:2x2
jax: 0.10.0
libtpu: 0.0.40
codegen_flags: <defaults>
</compile_context>

<pallas_src>
import jax
import jax.numpy as jnp
from jax.experimental import pallas as pl
from jax.experimental.pallas import tpu as pltpu


# ----------------------------------------------------------------------------
# Generic tiled matmul + bias kernel (both time-parallel projections)
# ----------------------------------------------------------------------------

def _matmul_bias_kernel(x_ref, w_ref, b_ref, o_ref):
    """o = x @ w + b for one (tm, tn) output tile; K carried in full.
    x/w are bf16, accumulation is f32, output dtype is o_ref.dtype."""
    acc = jnp.dot(x_ref[...], w_ref[...], preferred_element_type=jnp.float32)
    o_ref[...] = (acc + b_ref[...]).astype(o_ref.dtype)


def _round_up(x, m):
    return ((x + m - 1) // m) * m


def _matmul_bias(x_bf16, w_bf16, b_f32, out_dtype):
    """(M, K)bf16 @ (K, N)bf16 + b, tiled over M and N with masked tails."""
    M, K = x_bf16.shape
    _, N = w_bf16.shape
    tm = min(256, _round_up(M, 8))       # sublane-aligned
    tn = min(512, _round_up(N, 128))     # lane-aligned, VMEM-friendly
    grid = (pl.cdiv(M, tm), pl.cdiv(N, tn))
    b2 = b_f32.reshape(1, N).astype(jnp.float32)

    return pl.pallas_call(
        _matmul_bias_kernel,
        out_shape=jax.ShapeDtypeStruct((M, N), out_dtype),
        grid_spec=pltpu.PrefetchScalarGridSpec(
            num_scalar_prefetch=0,
            grid=grid,
            in_specs=[
                pl.BlockSpec((tm, K), lambda i, j: (i, 0)),   # activations
                pl.BlockSpec((K, tn), lambda i, j: (0, j)),   # weights
                pl.BlockSpec((1, tn), lambda i, j: (0, j)),   # bias
            ],
            out_specs=pl.BlockSpec((tm, tn), lambda i, j: (i, j)),
        ),
        compiler_params=pltpu.CompilerParams(
            dimension_semantics=("parallel", "parallel"),
        ),
    )(x_bf16, w_bf16, b2)


# ----------------------------------------------------------------------------
# Sequential LSTM recurrence (input gates precomputed, time-major, chunked)
# ----------------------------------------------------------------------------

def _lstm_recurrence_kernel(gx_ref, h0_ref, c0_ref, whh_ref,
                            hs_ref, hN_ref, cN_ref,
                            h_sc, c_sc):
    """One grid step == TC LSTM timesteps (statically unrolled).

    gx_ref  : (TC, TB, 4H) bf16   precomputed x_t @ W_ih^T + (b_ih + b_hh)
    h0_ref  : (TB, H)      f32    initial hidden state (this batch block)
    c0_ref  : (TB, H)      f32    initial cell state
    whh_ref : (H, 4H)      bf16   hidden->gates weights (gate order i,f,g,o)
    hs_ref  : (TC, TB, H)  bf16   per-step hidden states (time-major slab)
    hN_ref  : (TB, H)      f32    final hidden state
    cN_ref  : (TB, H)      f32    final cell state
    h_sc/c_sc : (TB, H)    f32    VMEM scratch carrying the recurrent state
    """
    t_chunk = pl.program_id(1)

    @pl.when(t_chunk == 0)
    def _():
        h_sc[...] = h0_ref[...]
        c_sc[...] = c0_ref[...]

    H = h_sc.shape[-1]
    tc = gx_ref.shape[0]
    whh = whh_ref[...]                 # hoisted: loaded once per grid step

    for j in range(tc):                # static unroll over the time chunk
        gx_j = gx_ref[j].astype(jnp.float32)               # dense (TB, 4H)
        gates = gx_j + jnp.dot(h_sc[...].astype(jnp.bfloat16), whh,
                               preferred_element_type=jnp.float32)
        i_g = jax.nn.sigmoid(gates[:, 0 * H:1 * H])
        f_g = jax.nn.sigmoid(gates[:, 1 * H:2 * H])
        g_g = jnp.tanh(gates[:, 2 * H:3 * H])
        o_g = jax.nn.sigmoid(gates[:, 3 * H:4 * H])

        c_t = f_g * c_sc[...] + i_g * g_g
        h_t = o_g * jnp.tanh(c_t)

        h_sc[...] = h_t
        c_sc[...] = c_t
        hs_ref[j] = h_t.astype(hs_ref.dtype)                # dense (TB, H) store

    # Keep the final-state output buffers current every chunk (robust against
    # any block-revisit writeback behavior; the last chunk's value survives).
    hN_ref[...] = h_sc[...]
    cN_ref[...] = c_sc[...]


def _pick_time_chunk(T):
    for tc in (64, 32, 16, 8):
        if T % tc == 0:
            return tc
    return T  # small / odd T: one chunk covering the whole sequence


def _pick_batch_block(B):
    # Tile batch only when it splits into >=8-row blocks (v7x megacore);
    # for small B keep a single block (recurrence is latency-bound anyway).
    if B % 8 == 0 and B > 8:
        return 8
    return B


# ----------------------------------------------------------------------------
# Public forward
# ----------------------------------------------------------------------------

def caption_decoder_forward(features, params, hidden=None):
    """features: (B, T, D) f32.  Returns (logits (B, T, V) f32, (h_n, c_n))."""
    B, T, D = features.shape
    H = params["w_hh_t"].shape[0]
    V = params["w_fc_t"].shape[1]
    f32, bf16 = jnp.float32, jnp.bfloat16

    if hidden is None:
        h0 = jnp.zeros((B, H), f32)
        c0 = jnp.zeros((B, H), f32)
    else:
        h0 = hidden[0].reshape(B, H).astype(f32)
        c0 = hidden[1].reshape(B, H).astype(f32)

    w_ih = params["w_ih_t"].astype(bf16)          # (D, 4H)
    w_hh = params["w_hh_t"].astype(bf16)          # (H, 4H)
    w_fc = params["w_fc_t"].astype(bf16)          # (H, V)
    lstm_bias = (params["b_ih"] + params["b_hh"]).astype(f32)

    # Time-major features (small, one-time swap) -> dense per-step tiles later.
    x_tm = jnp.transpose(features, (1, 0, 2)).astype(bf16)   # (T, B, D)

    # 1) Time-parallel input projection, gates emitted in bf16 (time-major).
    gates_x = _matmul_bias(x_tm.reshape(T * B, D), w_ih, lstm_bias,
                           out_dtype=bf16).reshape(T, B, 4 * H)  # free reshape

    # 2) Sequential recurrence, chunked over time, batch-blocked ("parallel").
    TC = _pick_time_chunk(T)
    TB = _pick_batch_block(B)
    n_chunks = T // TC

    hs_tm, h_n, c_n = pl.pallas_call(
        _lstm_recurrence_kernel,
        out_shape=(
            jax.ShapeDtypeStruct((T, B, H), bf16),     # hidden states (time-major)
            jax.ShapeDtypeStruct((B, H), f32),         # h_n
            jax.ShapeDtypeStruct((B, H), f32),         # c_n
        ),
        grid_spec=pltpu.PrefetchScalarGridSpec(
            num_scalar_prefetch=0,
            grid=(B // TB, n_chunks),
            in_specs=[
                pl.BlockSpec((TC, TB, 4 * H), lambda b, t: (t, b, 0)),  # gates_x
                pl.BlockSpec((TB, H), lambda b, t: (b, 0)),             # h0
                pl.BlockSpec((TB, H), lambda b, t: (b, 0)),             # c0
                pl.BlockSpec((H, 4 * H), lambda b, t: (0, 0)),          # W_hh^T
            ],
            out_specs=[
                pl.BlockSpec((TC, TB, H), lambda b, t: (t, b, 0)),      # hs
                pl.BlockSpec((TB, H), lambda b, t: (b, 0)),             # h_n
                pl.BlockSpec((TB, H), lambda b, t: (b, 0)),             # c_n
            ],
            scratch_shapes=[
                pltpu.VMEM((TB, H), f32),                               # h carry
                pltpu.VMEM((TB, H), f32),                               # c carry
            ],
        ),
        compiler_params=pltpu.CompilerParams(
            dimension_semantics=("parallel", "arbitrary"),   # batch ||, time seq
        ),
    )(gates_x, h0, c0, w_hh)

    # 3) Vocabulary projection: swap hs to batch-major once (small, bf16),
    #    then one big bf16 matmul -> logits directly in (B, T, V) f32.
    hs = jnp.transpose(hs_tm, (1, 0, 2))                    # (B, T, H) bf16
    logits = _matmul_bias(hs.reshape(B * T, H), w_fc,
                          params["b_fc"].astype(f32), out_dtype=f32)
    outputs = logits.reshape(B, T, V)                        # free reshape

    return outputs, (h_n[None], c_n[None])                   # hidden: (1, B, H)


# ----------------------------------------------------------------------------
# Params, reference, test harness
# ----------------------------------------------------------------------------

def init_params(key, feature_dim, hidden_dim, vocab_size):
    """Deterministic synthetic parameters (PyTorch-style uniform init, f32)."""
    ks = jax.random.split(key, 6)
    k_lstm = 1.0 / jnp.sqrt(hidden_dim)
    k_fc = 1.0 / jnp.sqrt(hidden_dim)
    # Stored pre-transposed for right-multiplication; PyTorch gate order i,f,g,o.
    return {
        "w_ih_t": jax.random.uniform(ks[0], (feature_dim, 4 * hidden_dim),
                                     jnp.float32, -k_lstm, k_lstm),
        "w_hh_t": jax.random.uniform(ks[1], (hidden_dim, 4 * hidden_dim),
                                     jnp.float32, -k_lstm, k_lstm),
        "b_ih": jax.random.uniform(ks[2], (4 * hidden_dim,),
                                   jnp.float32, -k_lstm, k_lstm),
        "b_hh": jax.random.uniform(ks[3], (4 * hidden_dim,),
                                   jnp.float32, -k_lstm, k_lstm),
        "w_fc_t": jax.random.uniform(ks[4], (hidden_dim, vocab_size),
                                     jnp.float32, -k_fc, k_fc),
        "b_fc": jax.random.uniform(ks[5], (vocab_size,),
                                   jnp.float32, -k_fc, k_fc),
    }


def _reference_forward(features, params):
    """Pure-JAX f32 reference (lax.scan) reproducing torch.nn.LSTM + Linear."""
    B, T, D = features.shape
    H = params["w_hh_t"].shape[0]
    bias = params["b_ih"] + params["b_hh"]

    def step(carry, x_t):
        h, c = carry
        gates = x_t @ params["w_ih_t"] + h @ params["w_hh_t"] + bias
        i = jax.nn.sigmoid(gates[:, 0 * H:1 * H])
        f = jax.nn.sigmoid(gates[:, 1 * H:2 * H])
        g = jnp.tanh(gates[:, 2 * H:3 * H])
        o = jax.nn.sigmoid(gates[:, 3 * H:4 * H])
        c_t = f * c + i * g
        h_t = o * jnp.tanh(c_t)
        return (h_t, c_t), h_t

    init = (jnp.zeros((B, H), jnp.float32), jnp.zeros((B, H), jnp.float32))
    (h_n, c_n), hs = jax.lax.scan(step, init, jnp.transpose(features, (1, 0, 2)))
    outs = jnp.transpose(hs, (1, 0, 2)) @ params["w_fc_t"] + params["b_fc"]
    return outs, (h_n[None], c_n[None])


if __name__ == "__main__":
    # Small shapes consistent with the module's forward (B, T, feature_dim).
    # H kept a multiple of 128 so gate slices are lane-aligned.
    B, T = 2, 8
    feature_dim = 128
    hidden_dim = 128
    vocab_size = 512

    key = jax.random.PRNGKey(0)
    k_params, k_feat = jax.random.split(key)
    params = init_params(k_params, feature_dim, hidden_dim, vocab_size)
    features = jax.random.normal(k_feat, (B, T, feature_dim), jnp.float32)

    outputs, (h_n, c_n) = caption_decoder_forward(features, params)
    jax.block_until_ready((outputs, h_n, c_n))

    # Sanity check against a pure-JAX f32 reference (bf16 MXU => loose tol).
    ref_out, (ref_h, ref_c) = _reference_forward(features, params)
    assert outputs.shape == (B, T, vocab_size)
    assert h_n.shape == (1, B, hidden_dim) and c_n.shape == (1, B, hidden_dim)
    assert jnp.allclose(outputs, ref_out, atol=3e-2, rtol=3e-2)
    assert jnp.allclose(h_n, ref_h, atol=2e-2, rtol=2e-2)
    assert jnp.allclose(c_n, ref_c, atol=2e-2, rtol=2e-2)

    print("KERNEL_OK")
</pallas_src>

<mosaic_0001>
module attributes {stable_mosaic.version = 11 : i64} {
  func.func @_matmul_bias_kernel(%arg0: i32, %arg1: i32, %arg2: memref<16x128xbf16, #tpu.memory_space<vmem>>, %arg3: memref<128x512xbf16, #tpu.memory_space<vmem>>, %arg4: memref<1x512xf32, #tpu.memory_space<vmem>>, %arg5: memref<16x512xbf16, #tpu.memory_space<vmem>>) attributes {dimension_semantics = [#tpu.dimension_semantics<parallel>, #tpu.dimension_semantics<parallel>], iteration_bounds = array<i64: 1, 1>, scalar_prefetch = 0 : i64, scratch_operands = 0 : i64, tpu.core_type = #tpu.core_type<tc>, window_params = [{transform_indices = @transform_0, window_bounds = array<i64: 16, 128>}, {transform_indices = @transform_1, window_bounds = array<i64: 128, 512>}, {transform_indices = @transform_2, window_bounds = array<i64: 1, 512>}, {transform_indices = @transform_3, window_bounds = array<i64: 16, 512>}]} {
    %c0 = arith.constant 0 : index
    %c0_0 = arith.constant 0 : index
    %0 = vector.load %arg2[%c0, %c0_0] : memref<16x128xbf16, #tpu.memory_space<vmem>>, vector<16x128xbf16>
    %c0_1 = arith.constant 0 : index
    %c0_2 = arith.constant 0 : index
    %1 = vector.load %arg3[%c0_1, %c0_2] : memref<128x512xbf16, #tpu.memory_space<vmem>>, vector<128x512xbf16>
    %cst = arith.constant dense<0.000000e+00> : vector<16x512xf32>
    %2 = tpu.matmul %0, %1, %cst {dimension_numbers = #tpu.dot_dimension_numbers<[1], [0], [0], [1], [0, 0, 1, 1], [], []>} : vector<16x128xbf16>, vector<128x512xbf16>, vector<16x512xf32> -> vector<16x512xf32>
    %c0_3 = arith.constant 0 : index
    %c0_4 = arith.constant 0 : index
    %3 = vector.load %arg4[%c0_3, %c0_4] : memref<1x512xf32, #tpu.memory_space<vmem>>, vector<1x512xf32>
    %4 = vector.broadcast %3 : vector<1x512xf32> to vector<16x512xf32>
    %5 = arith.addf %2, %4 : vector<16x512xf32>
    %6 = arith.truncf %5 : vector<16x512xf32> to vector<16x512xbf16>
    %c0_5 = arith.constant 0 : index
    %c0_6 = arith.constant 0 : index
    %7 = vector.load %arg5[%c0_5, %c0_6] : memref<16x512xbf16, #tpu.memory_space<vmem>>, vector<16x512xbf16>
    tpu.vector_store %arg5[%c0_5, %c0_6], %6 {strides = array<i32>} : memref<16x512xbf16, #tpu.memory_space<vmem>>, vector<16x512xbf16>,
    return
  }
  func.func @transform_0(%arg0: i32, %arg1: i32) -> (i32, i32) {
    %c0_i32 = arith.constant 0 : i32
    %c0_i32_0 = arith.constant 0 : i32
    return %arg0, %c0_i32 : i32, i32
  }
  func.func @transform_1(%arg0: i32, %arg1: i32) -> (i32, i32) {
    %c0_i32 = arith.constant 0 : i32
    %c0_i32_0 = arith.constant 0 : i32
    return %c0_i32, %arg1 : i32, i32
  }
  func.func @transform_2(%arg0: i32, %arg1: i32) -> (i32, i32) {
    %c0_i32 = arith.constant 0 : i32
    %c0_i32_0 = arith.constant 0 : i32
    return %c0_i32, %arg1 : i32, i32
  }
  func.func @transform_3(%arg0: i32, %arg1: i32) -> (i32, i32) {
    %c0_i32 = arith.constant 0 : i32
    return %arg0, %arg1 : i32, i32
  }
}

</mosaic_0001>

<bundles_post_ra>
// kernel: tpu_custom_call.1
= control target key start
LH: loop header
LB: loop body
LE: loop exit
PB: predicated region body
PF: predicated region fallthrough
CT: control target
= control target key end

     0   :  { %8 = vsyncpa [#allocation3], 0  ;;  %s675_s0 = inlined_call_operand.hbm [shape: bf16[16,128], index: 0, kind: input, shape index: {}]   ;;  %s676_s1 = inlined_call_operand.hbm [shape: bf16[128,512], index: 1, kind: input, shape index: {}]   ;;  %s677_s2 = inlined_call_operand.hbm [shape: f32[1,512], index: 2, kind: input, shape index: {}]   ;;  %s678_s3 = inlined_call_operand.hbm [shape: bf16[16,512], index: 3, kind: output, shape index: {}]  }
   0x1   :  { %9 = vsyncpa [#allocation6], 0  ;;  %s28_s14 = sshll.u32 %s676_s1, 4  ;;  %s29_s14 = int_to_ptr.hbm [resolvable:$true] %s28_s14 }
   0x2   :  { %10 = vsyncpa [#allocation4], 0  ;;  %s629_s15 = smov [#allocation5]   ;;  %s15_s19 = sshll.u32 %s675_s0, 4  ;;  %s16_s19 = int_to_ptr.hbm [resolvable:$true] %s15_s19 }
   0x3   :  { %s30_s16 = sshll.u32 %s629_s15, 4  ;;  %s630_s20 = smov 256   ;;  %s31_s16 = int_to_ptr.vmem [resolvable:$true] %s30_s16 }
   0x4   :  { %s631_s21 = smov 16   ;;  %s632_s22 = smov [#allocation2]  }
   0x5   :  { %36 = dma.hbm_to_vmem [thread:$0]  %s29_s14, 4096, %s31_s16, [#allocation6], %s630_s20, %s630_s20, %s631_s21  }
   0x6   :  { %s17_s23 = sshll.u32 %s632_s22, 4  ;;  %s633_s1 = smov 64   ;;  %s18_s23 = int_to_ptr.vmem [resolvable:$true] %s17_s23 }
   0x7   :  { %s634_s24 = smov 4   ;;  %s42_s27 = sshll.u32 %s677_s2, 4  ;;  %s43_s27 = int_to_ptr.hbm [resolvable:$true] %s42_s27 }
   0x8   :  { %23 = dma.hbm_to_vmem [thread:$0]  %s16_s19, 128, %s18_s23, [#allocation3], %s633_s1, %s633_s1, %s634_s24  }
   0x9   :  { %s635_s28 = smov [#allocation7]  }
   0xa   :  { %s44_s0 = sshll.u32 %s635_s28, 4  ;;  %s45_s0 = int_to_ptr.vmem [resolvable:$true] %s44_s0 }
   0xb   :  { %47 = dma.hbm_to_vmem [thread:$0]  %s43_s27, 64, %s45_s0, [#allocation6]  }
   0xc   :  { %623 = dma.done.wait [#allocation3], 128  }
   0xd   :  { %624 = vsyncadd [#allocation3], 4294967168 }
   0xe   :  { %625 = dma.done.wait [#allocation6], 4160  }
   0xf   :  { %626 = vsyncadd [#allocation6], 4294963136  ;;  %v472_v0 = vld [vmem:[#allocation5 + $0xe0] sm:$0xf]  ;;  %v517_v1 = vld [vmem:[#allocation5 + $0xec] sm:$0xf0] }
  0x10   :  { %v515_v2 = vld [vmem:[#allocation5 + $0xe4] sm:$0xf]  ;;  %v473_v3 = vor.u32 %v517_v1, %v472_v0  ;;  %v474_v4 = vld [vmem:[#allocation5 + $0xf0] sm:$0xf0]  ;;  %v480_v5 = vld [vmem:[#allocation5 + $0xe8] sm:$0xf] }
  0x11   :  { %v518_v6 = vld [vmem:[#allocation5 + $0xf4] sm:$0xf0]  ;;  %v477_v7 = vor.u32 %v515_v2, %v474_v4  ;;  %v516_v9 = vld [vmem:[#allocation5 + $0xec] sm:$0xf]  ;;  %v482_v10 = vld [vmem:[#allocation5 + $0xf8] sm:$0xf0] }
  0x12   :  { %v481_v8 = vor.u32 %v518_v6, %v480_v5  ;;  %v456_v11 = vld [vmem:[#allocation5 + $0xc0] sm:$0xf]  ;;  %270 = vmatpush.bf16.msra.mxu0 %v473_v3  ;;  %v485_v12 = vor.u32 %v516_v9, %v482_v10  ;;  %v513_v13 = vld [vmem:[#allocation5 + $0xcc] sm:$0xf0]  ;;  %v511_v14 = vld [vmem:[#allocation5 + $0xc4] sm:$0xf] }
  0x13   :  { %v458_v15 = vld [vmem:[#allocation5 + $0xd0] sm:$0xf0]  ;;  %284 = vmatpush.bf16.msra.mxu1 %v477_v7  ;;  %v457_v16 = vor.u32 %v513_v13, %v456_v11  ;;  %v464_v18 = vld [vmem:[#allocation5 + $0xc8] sm:$0xf]  ;;  %v514_v19 = vld [vmem:[#allocation5 + $0xd4] sm:$0xf0] }
  0x14   :  { %298 = vmatpush.bf16.msra.mxu2 %v481_v8  ;;  %v461_v17 = vor.u32 %v511_v14, %v458_v15  ;;  %v512_v20 = vld [vmem:[#allocation5 + $0xcc] sm:$0xf]  ;;  %312 = vmatpush.bf16.msra.mxu3 %v485_v12  ;;  %v465_v21 = vor.u32 %v514_v19, %v464_v18  ;;  %v466_v22 = vld [vmem:[#allocation5 + $0xd8] sm:$0xf0]  ;;  %v440_v23 = vld [vmem:[#allocation5 + $0xa0] sm:$0xf] }
  0x15   :  { %v509_v24 = vld [vmem:[#allocation5 + $0xac] sm:$0xf0]  ;;  %v469_v25 = vor.u32 %v512_v20, %v466_v22  ;;  %v507_v26 = vld [vmem:[#allocation5 + $0xa4] sm:$0xf]  ;;  %v442_v27 = vld [vmem:[#allocation5 + $0xb0] sm:$0xf0] }
  0x16   :  { %v448_v28 = vld [vmem:[#allocation5 + $0xa8] sm:$0xf]  ;;  %271 = vmatpush.bf16.msra.mxu0 %v457_v16  ;;  %v441_v29 = vor.u32 %v509_v24, %v440_v23  ;;  %v510_v30 = vld [vmem:[#allocation5 + $0xb4] sm:$0xf0]  ;;  %v508_v31 = vld [vmem:[#allocation5 + $0xac] sm:$0xf]  ;;  %v445_v33 = vor.u32 %v507_v26, %v442_v27 }
  0x17   :  { %v450_v32 = vld [vmem:[#allocation5 + $0xb8] sm:$0xf0]  ;;  %285 = vmatpush.bf16.msra.mxu1 %v461_v17  ;;  %v449_v34 = vor.u32 %v510_v30, %v448_v28  ;;  %v424_v35 = vld [vmem:[#allocation5 + $0x80] sm:$0xf]  ;;  %v505_v36 = vld [vmem:[#allocation5 + $0x8c] sm:$0xf0] }
  0x18   :  { %299 = vmatpush.bf16.msra.mxu2 %v465_v21  ;;  %v503_v37 = vld [vmem:[#allocation5 + $0x84] sm:$0xf]  ;;  %313 = vmatpush.bf16.msra.mxu3 %v469_v25  ;;  %v453_v38 = vor.u32 %v508_v31, %v450_v32  ;;  %v426_v39 = vld [vmem:[#allocation5 + $0x90] sm:$0xf0]  ;;  %v432_v40 = vld [vmem:[#allocation5 + $0x88] sm:$0xf]  ;;  %v425_v44 = vor.u32 %v505_v36, %v424_v35 }
  0x19   :  { %v506_v41 = vld [vmem:[#allocation5 + $0x94] sm:$0xf0]  ;;  %v504_v42 = vld [vmem:[#allocation5 + $0x8c] sm:$0xf]  ;;  %v434_v43 = vld [vmem:[#allocation5 + $0x98] sm:$0xf0]  ;;  %v429_v45 = vor.u32 %v503_v37, %v426_v39 }
  0x1a   :  { %272 = vmatpush.bf16.msra.mxu0 %v441_v29  ;;  %v433_v46 = vor.u32 %v506_v41, %v432_v40  ;;  %v408_v47 = vld [vmem:[#allocation5 + $0x60] sm:$0xf]  ;;  %v501_v48 = vld [vmem:[#allocation5 + $0x6c] sm:$0xf0]  ;;  %v499_v49 = vld [vmem:[#allocation5 + $0x64] sm:$0xf]  ;;  %v437_v50 = vor.u32 %v504_v42, %v434_v43 }
  0x1b   :  { %286 = vmatpush.bf16.msra.mxu1 %v445_v33  ;;  %v410_v51 = vld [vmem:[#allocation5 + $0x70] sm:$0xf0]  ;;  %v416_v52 = vld [vmem:[#allocation5 + $0x68] sm:$0xf]  ;;  %v502_v53 = vld [vmem:[#allocation5 + $0x74] sm:$0xf0]  ;;  %v409_v56 = vor.u32 %v501_v48, %v408_v47 }
  0x1c   :  { %300 = vmatpush.bf16.msra.mxu2 %v449_v34  ;;  %314 = vmatpush.bf16.msra.mxu3 %v453_v38  ;;  %v500_v54 = vld [vmem:[#allocation5 + $0x6c] sm:$0xf]  ;;  %v418_v55 = vld [vmem:[#allocation5 + $0x78] sm:$0xf0]  ;;  %v413_v57 = vor.u32 %v499_v49, %v410_v51  ;;  %v417_v58 = vor.u32 %v502_v53, %v416_v52  ;;  %v392_v59 = vld [vmem:[#allocation5 + $0x40] sm:$0xf] }
  0x1d   :  { %v497_v60 = vld [vmem:[#allocation5 + $0x4c] sm:$0xf0]  ;;  %v495_v61 = vld [vmem:[#allocation5 + $0x44] sm:$0xf]  ;;  %v421_v62 = vor.u32 %v500_v54, %v418_v55  ;;  %v394_v63 = vld [vmem:[#allocation5 + $0x50] sm:$0xf0] }
  0x1e   :  { %273 = vmatpush.bf16.msra.mxu0 %v425_v44  ;;  %v400_v0 = vld [vmem:[#allocation5 + $0x48] sm:$0xf]  ;;  %v498_v1 = vld [vmem:[#allocation5 + $0x54] sm:$0xf0]  ;;  %v496_v2 = vld [vmem:[#allocation5 + $0x4c] sm:$0xf]  ;;  %v393_v4 = vor.u32 %v497_v60, %v392_v59  ;;  %v397_v5 = vor.u32 %v495_v61, %v394_v63 }
  0x1f   :  { %287 = vmatpush.bf16.msra.mxu1 %v429_v45  ;;  %v402_v3 = vld [vmem:[#allocation5 + $0x58] sm:$0xf0]  ;;  %v401_v6 = vor.u32 %v498_v1, %v400_v0  ;;  %v376_v7 = vld [vmem:[#allocation5 + $0x20] sm:$0xf]  ;;  %v493_v8 = vld [vmem:[#allocation5 + $0x2c] sm:$0xf0] }
  0x20   :  { %301 = vmatpush.bf16.msra.mxu2 %v433_v46  ;;  %315 = vmatpush.bf16.msra.mxu3 %v437_v50  ;;  %v491_v9 = vld [vmem:[#allocation5 + $0x24] sm:$0xf]  ;;  %v405_v10 = vor.u32 %v496_v2, %v402_v3  ;;  %v378_v11 = vld [vmem:[#allocation5 + $0x30] sm:$0xf0]  ;;  %v384_v12 = vld [vmem:[#allocation5 + $0x28] sm:$0xf]  ;;  %v377_v16 = vor.u32 %v493_v8, %v376_v7 }
  0x21   :  { %v494_v13 = vld [vmem:[#allocation5 + $0x34] sm:$0xf0]  ;;  %v492_v14 = vld [vmem:[#allocation5 + $0x2c] sm:$0xf]  ;;  %v386_v15 = vld [vmem:[#allocation5 + $0x38] sm:$0xf0]  ;;  %v381_v17 = vor.u32 %v491_v9, %v378_v11 }
  0x22   :  { %274 = vmatpush.bf16.msra.mxu0 %v409_v56  ;;  %v385_v18 = vor.u32 %v494_v13, %v384_v12  ;;  %v360_v19 = vld [vmem:[#allocation5] sm:$0xf]  ;;  %v489_v20 = vld [vmem:[#allocation5 + $0xc] sm:$0xf0]  ;;  %v487_v21 = vld [vmem:[#allocation5 + $0x4] sm:$0xf]  ;;  %v389_v22 = vor.u32 %v492_v14, %v386_v15 }
  0x23   :  { %288 = vmatpush.bf16.msra.mxu1 %v413_v57  ;;  %v362_v23 = vld [vmem:[#allocation5 + $0x10] sm:$0xf0]  ;;  %v368_v24 = vld [vmem:[#allocation5 + $0x8] sm:$0xf]  ;;  %v490_v25 = vld [vmem:[#allocation5 + $0x14] sm:$0xf0]  ;;  %v361_v28 = vor.u32 %v489_v20, %v360_v19 }
  0x24   :  { %302 = vmatpush.bf16.msra.mxu2 %v417_v58  ;;  %316 = vmatpush.bf16.msra.mxu3 %v421_v62  ;;  %v488_v26 = vld [vmem:[#allocation5 + $0xc] sm:$0xf]  ;;  %v370_v27 = vld [vmem:[#allocation5 + $0x18] sm:$0xf0]  ;;  %v365_v29 = vor.u32 %v487_v21, %v362_v23  ;;  %v369_v30 = vor.u32 %v490_v25, %v368_v24  ;;  %v94_v33 = vld [vmem:[#allocation7] sm:$0xf] }
  0x25   :  { %v373_v31 = vor.u32 %v488_v26, %v370_v27  ;;  %v486_v32 = vld [vmem:[#allocation2] sm:$0xff]  ;;  %v96_v34 = vperm.slane %v94_v33, 0  ;;  %v97_v35 = vperm.slane %v94_v33, 1  ;;  %v98_v41 = vperm.slane %v94_v33, 2  ;;  %s636_s2 = smov [#allocation8]   ;;  %s340_s5 = sshll.u32 %s678_s3, 4  ;;  %s341_s5 = int_to_ptr.hbm [resolvable:$true] %s340_s5 }
  0x26   :  { %275 = vmatpush.bf16.msra.mxu0 %v393_v4  ;;  %v99_v42 = vperm.slane %v94_v33, 3  ;;  %s338_s29 = sshll.u32 %s636_s2, 4  ;;  %s339_s29 = int_to_ptr.vmem [resolvable:$true] %s338_s29 }
  0x27   :  { %289 = vmatpush.bf16.msra.mxu1 %v397_v5 }
  0x28   :  { %303 = vmatpush.bf16.msra.mxu2 %v401_v6  ;;  %317 = vmatpush.bf16.msra.mxu3 %v405_v10 }
  0x2a   :  { %276 = vmatpush.bf16.msra.mxu0 %v377_v16 }
  0x2b   :  { %290 = vmatpush.bf16.msra.mxu1 %v381_v17 }
  0x2c   :  { %304 = vmatpush.bf16.msra.mxu2 %v385_v18  ;;  %318 = vmatpush.bf16.msra.mxu3 %v389_v22 }
  0x2e   :  { %277 = vmatpush.bf16.msra.mxu0 %v361_v28 }
  0x2f   :  { %291 = vmatpush.bf16.msra.mxu1 %v365_v29 }
  0x30   :  { %305 = vmatpush.bf16.msra.mxu2 %v369_v30  ;;  %319 = vmatpush.bf16.msra.mxu3 %v373_v31 }
  0x31   :  { %278 = vmatmul.bf16.vlgmr.msra.gmra.mxu0 %v486_v32 }
  0x32   :  { %292 = vmatmul.bf16.vlgmr.msra.gmra.mxu1 %v486_v32 }
  0x33   :  { %306 = vmatmul.bf16.vlgmr.msra.gmra.mxu2 %v486_v32  ;;  %320 = vmatmul.bf16.vlgmr.msra.gmra.mxu3 %v486_v32 }
  0xae   :  { %v279_v36 = vpop.f32.mrf.mxu0 }
  0xaf   :  { %v280_v37 = vadd.f32 %v279_v36, %v96_v34  ;;  %v293_v38 = vpop.f32.mrf.mxu1 }
  0xb0   :  { %v294_v39 = vadd.f32 %v293_v38, %v97_v35 }
  0xb2   :  { %v326_v40 = vpack.c.bf16 %v294_v39, %v280_v37 }
  0xb4   :  { %330 = vst [vmem:[#allocation8] sm:$0xff] %v326_v40 }
  0xb6   :  { %v307_v43 = vpop.f32.mrf.mxu2  ;;  %v321_v45 = vpop.f32.mrf.mxu3 }
  0xb7   :  { %v308_v44 = vadd.f32 %v307_v43, %v98_v41  ;;  %v281_v46 = vpop.f32.mrf.mxu0  ;;  %v322_v47 = vadd.f32 %v321_v45, %v99_v42  ;;  %v295_v49 = vpop.f32.mrf.mxu1 }
  0xb8   :  { %v282_v48 = vadd.f32 %v281_v46, %v96_v34  ;;  %v296_v50 = vadd.f32 %v295_v49, %v97_v35 }
  0xb9   :  { %v327_v51 = vpack.c.bf16 %v322_v47, %v308_v44 }
  0xba   :  { %v328_v52 = vpack.c.bf16 %v296_v50, %v282_v48 }
  0xbb   :  { %331 = vst [vmem:[#allocation8 + $0x8] sm:$0xff] %v327_v51 }
  0xbc   :  { %332 = vst [vmem:[#allocation8 + $0x10] sm:$0xff] %v328_v52 }
  0xbe   :  { %v309_v53 = vpop.f32.mrf.mxu2  ;;  %v323_v55 = vpop.f32.mrf.mxu3 }
  0xbf   :  { %v310_v54 = vadd.f32 %v309_v53, %v98_v41  ;;  %v324_v56 = vadd.f32 %v323_v55, %v99_v42 }
  0xc1   :  { %v329_v57 = vpack.c.bf16 %v324_v56, %v310_v54 }
  0xc3   :  { %333 = vst [vmem:[#allocation8 + $0x18] sm:$0xff] %v329_v57 }
  0xc4   :  { %346 = dma.vmem_to_hbm [thread:$0]  %s339_s29, 512, %s341_s5, [#allocation4], %s630_s20, %s630_s20, %s631_s21  }
  0xc5   :  { %627 = dma.done.wait [#allocation4], 512  }
  0xc6   :  { %628 = vsyncadd [#allocation4], 4294966784 }
  0xc7   :  { %351 = vsyncpa [#allocation3], 1 }
  0xc8   :  { %352 = vsyncpa [#allocation6], 1 }
  0xc9   :  { %353 = vsyncpa [#allocation4], 1 }

</bundles_post_ra>
